<compile_context>
chip_gen: v7x
topology: tpu7x:2x2x1
jax: 0.10.0
libtpu: 0.0.40
codegen_flags: <defaults>
</compile_context>

<pallas_src>
import math

import jax
import jax.numpy as jnp
from jax.experimental import pallas as pl
from jax.experimental.pallas import tpu as pltpu


def _ceil_to(n: int, m: int) -> int:
    return ((n + m - 1) // m) * m


def torch_layer_kernel(x2_ref, w2_ref, b2_ref, tab_ref, ow_ref, o_ref):
    # x2_ref:  (TB, 2D)    x tiled 2L times along the feature axis (cos half | sin half)
    # w2_ref:  (1, 2D)     effective input weights (input scale folded), duplicated per half
    # b2_ref:  (1, 2D)     phase bias: 0 for the cos half, -pi/2 for the sin half
    # tab_ref: (2D, O_pad) bf16 stacked table [cos(theta).T ; -sin(theta).T]
    # ow_ref:  (1, O_pad)  effective output weights (output scale and 1/D folded)
    # o_ref:   (TB, O_pad) lane-dense output block
    #
    # TODO(synk): HybridFunction / analytical_executer (qiskit VQC expectation
    # evaluation) has no Pallas equivalent; stand-in is the analytic
    # single-qubit RY model <Z>_o = mean_j cos(a_j + theta_{o,j}), expanded via
    # cos(a+b) = cos(a)cos(b) - sin(a)sin(b) and evaluated as a single bf16 MXU
    # matmul (sin(a) obtained as cos(a - pi/2) so no in-kernel concat is needed).
    pre = x2_ref[...] * w2_ref[...] + b2_ref[...]            # (TB, 2D), VPU f32
    cs = jnp.cos(pre).astype(jnp.bfloat16)                   # EUP; = [cos(a) | sin(a)]
    o_ref[...] = (
        jnp.dot(cs, tab_ref[...], preferred_element_type=jnp.float32) * ow_ref[...]
    ).astype(o_ref.dtype)


def torch_layer_forward(x, params, *, reup_layers):
    """Pallas forward for torch_layer (see layout comment above)."""
    in_w = params["input_weights"].astype(jnp.float32)        # (1, D)
    theta = params["theta"].astype(jnp.float32)               # (O, D) surrogate layout
    out_w = params["output_weights"].astype(jnp.float32)      # (1, O)
    in_scale = params["input_scale"].astype(jnp.float32)      # (1,)
    out_scale = params["output_scale"].astype(jnp.float32)    # (1,)

    B, I = x.shape
    # data_reuploading_layers == 0 means "no tiling" in the module -> 1 reup pass.
    L = reup_layers if reup_layers != 0 else 1
    O = out_w.shape[1]
    D = I * L
    K = 2 * D
    assert in_w.shape == (1, D) and theta.shape == (O, D)

    # ---- parameter-only precompute (hoisted off the hot path) ----
    O_pad = _ceil_to(O, 128)                                   # lane-dense output
    in_w_eff = in_w * in_scale[0]                              # (1, D)
    w2 = jnp.concatenate([in_w_eff, in_w_eff], axis=1)         # (1, 2D)
    # Phase bias: cos half gets 0, sin half gets -pi/2  (sin(a) = cos(a - pi/2)).
    b2 = jnp.concatenate(
        [jnp.zeros((1, D), jnp.float32),
         jnp.full((1, D), -0.5 * math.pi, jnp.float32)], axis=1)          # (1, 2D)
    # Stacked bf16 theta table [cos(theta).T ; -sin(theta).T], padded to O_pad lanes.
    pad_o = ((0, 0), (0, O_pad - O))
    tab = jnp.concatenate(
        [jnp.pad(jnp.cos(theta).T, pad_o),
         jnp.pad(-jnp.sin(theta).T, pad_o)], axis=0).astype(jnp.bfloat16)  # (2D, O_pad)
    # Output weights with the output scale and the 1/D average folded in.
    ow_eff = jnp.pad(out_w * out_scale[0] / D, pad_o)                      # (1, O_pad)

    # ---- activation pre-expansion (one XLA tile; no in-kernel lane reshape) ----
    x2 = jnp.tile(x.astype(jnp.float32), (1, 2 * L))                       # (B, 2D)

    # ---- batch tiling: sublane-full, >=2 tiles when possible (v7x megacore), cap 512 ----
    if B <= 8:
        tile_b = 8
    elif B <= 1024:
        tile_b = _ceil_to(-(-B // 2), 8)          # split across the two TensorCores
    else:
        tile_b = 512                              # 128-aligned M for big batches
    num_b = -(-B // tile_b)
    B_pad = num_b * tile_b
    if B_pad != B:
        x2 = jnp.pad(x2, ((0, B_pad - B), (0, 0)))

    # ---- explicit VMEM budget from the actual block sizes (safe on 64 MiB v7x) ----
    block_bytes = (
        2 * (tile_b * K * 4)          # x2 double-buffer
        + 2 * 2 * (K * 4)             # w2 + bias double-buffers
        + 2 * (K * O_pad * 2)         # bf16 theta table double-buffer
        + 2 * (O_pad * 4)             # output-weight double-buffer
        + 2 * (tile_b * O_pad * 4)    # output double-buffer
    )
    vmem_limit = min(64 * 1024 * 1024, max(32 * 1024 * 1024, 2 * block_bytes))

    out = pl.pallas_call(
        torch_layer_kernel,
        grid=(num_b,),
        out_shape=jax.ShapeDtypeStruct((B_pad, O_pad), jnp.float32),
        in_specs=[
            pl.BlockSpec((tile_b, K), lambda b: (b, 0)),     # x2 (batch-tiled)
            pl.BlockSpec((1, K), lambda b: (0, 0)),          # input weights (resident)
            pl.BlockSpec((1, K), lambda b: (0, 0)),          # phase bias (resident)
            pl.BlockSpec((K, O_pad), lambda b: (0, 0)),      # theta table (resident)
            pl.BlockSpec((1, O_pad), lambda b: (0, 0)),      # output weights (resident)
        ],
        out_specs=pl.BlockSpec((tile_b, O_pad), lambda b: (b, 0)),
        compiler_params=pltpu.CompilerParams(
            dimension_semantics=("parallel",),
            vmem_limit_bytes=vmem_limit),
    )(x2, w2, b2, tab, ow_eff)

    return out[:B, :O]


if __name__ == "__main__":
    # Shapes implied by the module defaults: input_dim=4, output_dim=2,
    # data_reuploading_layers=4, batch=2.
    B, input_dim, output_dim, L = 2, 4, 2, 4
    D = input_dim * L

    key = jax.random.PRNGKey(0)
    k_x, k_inw, k_theta = jax.random.split(key, 3)

    x = jax.random.uniform(k_x, (B, input_dim), jnp.float32, -1.0, 1.0)

    params = {
        # add_weights(input_size=D, weights_type='unique', sampling='random'): U[0, pi)
        "input_weights": jax.random.uniform(k_inw, (1, D), jnp.float32, 0.0, math.pi),
        # base_layer quantum weights, 'random' init: U[0, pi); surrogate layout (O, D)
        "theta": jax.random.uniform(k_theta, (output_dim, D), jnp.float32, 0.0, math.pi),
        # add_weights(input_size=output_dim, 'unique', 'ones')
        "output_weights": jnp.ones((1, output_dim), jnp.float32),
        # add_weights(input_size=1, 'same', 'ones')  -> scalar ones
        "input_scale": jnp.ones((1,), jnp.float32),
        "output_scale": jnp.ones((1,), jnp.float32),
    }

    out = torch_layer_forward(x, params, reup_layers=L)
    jax.block_until_ready(out)
    assert out.shape == (B, output_dim) and out.dtype == jnp.float32

    # Pure-JAX f32 reference of the same surrogate (tolerance covers bf16 MXU operands).
    x_t = jnp.tile(x, (1, L)) * params["input_weights"] * params["input_scale"][0]
    hi = jax.lax.Precision.HIGHEST
    ref = (jnp.einsum("bd,od->bo", jnp.cos(x_t), jnp.cos(params["theta"]), precision=hi)
           - jnp.einsum("bd,od->bo", jnp.sin(x_t), jnp.sin(params["theta"]), precision=hi)) / D
    ref = ref * params["output_weights"] * params["output_scale"][0]
    assert float(jnp.max(jnp.abs(out - ref))) < 5e-2, "kernel does not match reference"

    print("KERNEL_OK")
</pallas_src>

<mosaic_0001>
module attributes {stable_mosaic.version = 11 : i64} {
  func.func @torch_layer_kernel(%arg0: i32, %arg1: memref<8x32xf32, #tpu.memory_space<vmem>>, %arg2: memref<1x32xf32, #tpu.memory_space<vmem>>, %arg3: memref<1x32xf32, #tpu.memory_space<vmem>>, %arg4: memref<32x128xbf16, #tpu.memory_space<vmem>>, %arg5: memref<1x128xf32, #tpu.memory_space<vmem>>, %arg6: memref<8x128xf32, #tpu.memory_space<vmem>>) attributes {dimension_semantics = [#tpu.dimension_semantics<parallel>], iteration_bounds = array<i64: 1>, scalar_prefetch = 0 : i64, scratch_operands = 0 : i64, tpu.core_type = #tpu.core_type<tc>, window_params = [{transform_indices = @transform_0, window_bounds = array<i64: 8, 32>}, {pipeline_mode = #tpu.pipeline_mode<synchronous>, transform_indices = @transform_1, window_bounds = array<i64: 1, 32>}, {pipeline_mode = #tpu.pipeline_mode<synchronous>, transform_indices = @transform_2, window_bounds = array<i64: 1, 32>}, {pipeline_mode = #tpu.pipeline_mode<synchronous>, transform_indices = @transform_3, window_bounds = array<i64: 32, 128>}, {pipeline_mode = #tpu.pipeline_mode<synchronous>, transform_indices = @transform_4, window_bounds = array<i64: 1, 128>}, {transform_indices = @transform_5, window_bounds = array<i64: 8, 128>}]} {
    %c0 = arith.constant 0 : index
    %c0_0 = arith.constant 0 : index
    %0 = vector.load %arg1[%c0, %c0_0] : memref<8x32xf32, #tpu.memory_space<vmem>>, vector<8x32xf32>
    %c0_1 = arith.constant 0 : index
    %c0_2 = arith.constant 0 : index
    %1 = vector.load %arg2[%c0_1, %c0_2] : memref<1x32xf32, #tpu.memory_space<vmem>>, vector<1x32xf32>
    %2 = vector.broadcast %1 : vector<1x32xf32> to vector<8x32xf32>
    %3 = arith.mulf %0, %2 : vector<8x32xf32>
    %c0_3 = arith.constant 0 : index
    %c0_4 = arith.constant 0 : index
    %4 = vector.load %arg3[%c0_3, %c0_4] : memref<1x32xf32, #tpu.memory_space<vmem>>, vector<1x32xf32>
    %5 = vector.broadcast %4 : vector<1x32xf32> to vector<8x32xf32>
    %6 = arith.addf %3, %5 : vector<8x32xf32>
    %7 = math.cos %6 : vector<8x32xf32>
    %8 = arith.truncf %7 : vector<8x32xf32> to vector<8x32xbf16>
    %c0_5 = arith.constant 0 : index
    %c0_6 = arith.constant 0 : index
    %9 = vector.load %arg4[%c0_5, %c0_6] : memref<32x128xbf16, #tpu.memory_space<vmem>>, vector<32x128xbf16>
    %cst = arith.constant dense<0.000000e+00> : vector<8x128xf32>
    %10 = tpu.matmul %8, %9, %cst {dimension_numbers = #tpu.dot_dimension_numbers<[1], [0], [0], [1], [0, 0, 1, 1], [], []>} : vector<8x32xbf16>, vector<32x128xbf16>, vector<8x128xf32> -> vector<8x128xf32>
    %c0_7 = arith.constant 0 : index
    %c0_8 = arith.constant 0 : index
    %11 = vector.load %arg5[%c0_7, %c0_8] : memref<1x128xf32, #tpu.memory_space<vmem>>, vector<1x128xf32>
    %12 = vector.broadcast %11 : vector<1x128xf32> to vector<8x128xf32>
    %13 = arith.mulf %10, %12 : vector<8x128xf32>
    %c0_9 = arith.constant 0 : index
    %c0_10 = arith.constant 0 : index
    %14 = vector.load %arg6[%c0_9, %c0_10] : memref<8x128xf32, #tpu.memory_space<vmem>>, vector<8x128xf32>
    tpu.vector_store %arg6[%c0_9, %c0_10], %13 {strides = array<i32>} : memref<8x128xf32, #tpu.memory_space<vmem>>, vector<8x128xf32>,
    return
  }
  func.func @transform_0(%arg0: i32) -> (i32, i32) {
    %c0_i32 = arith.constant 0 : i32
    %c0_i32_0 = arith.constant 0 : i32
    return %arg0, %c0_i32 : i32, i32
  }
  func.func @transform_1(%arg0: i32) -> (i32, i32) {
    %c0_i32 = arith.constant 0 : i32
    %c0_i32_0 = arith.constant 0 : i32
    %c0_i32_1 = arith.constant 0 : i32
    return %c0_i32, %c0_i32_0 : i32, i32
  }
  func.func @transform_2(%arg0: i32) -> (i32, i32) {
    %c0_i32 = arith.constant 0 : i32
    %c0_i32_0 = arith.constant 0 : i32
    %c0_i32_1 = arith.constant 0 : i32
    return %c0_i32, %c0_i32_0 : i32, i32
  }
  func.func @transform_3(%arg0: i32) -> (i32, i32) {
    %c0_i32 = arith.constant 0 : i32
    %c0_i32_0 = arith.constant 0 : i32
    %c0_i32_1 = arith.constant 0 : i32
    return %c0_i32, %c0_i32_0 : i32, i32
  }
  func.func @transform_4(%arg0: i32) -> (i32, i32) {
    %c0_i32 = arith.constant 0 : i32
    %c0_i32_0 = arith.constant 0 : i32
    %c0_i32_1 = arith.constant 0 : i32
    return %c0_i32, %c0_i32_0 : i32, i32
  }
  func.func @transform_5(%arg0: i32) -> (i32, i32) {
    %c0_i32 = arith.constant 0 : i32
    %c0_i32_0 = arith.constant 0 : i32
    return %arg0, %c0_i32 : i32, i32
  }
}

</mosaic_0001>

<bundles_post_ra>
// kernel: tpu_custom_call.1
= control target key start
LH: loop header
LB: loop body
LE: loop exit
PB: predicated region body
PF: predicated region fallthrough
CT: control target
= control target key end

     0   :  { %10 = vsyncpa [#allocation3], 0  ;;  %s486_s0 = inlined_call_operand.hbm [shape: f32[8,32], index: 0, kind: input, shape index: {}]   ;;  %s487_s1 = inlined_call_operand.vmem [shape: f32[1,32], index: 1, kind: input, shape index: {}]   ;;  %s488_s2 = inlined_call_operand.vmem [shape: f32[1,32], index: 2, kind: input, shape index: {}]   ;;  %s489_s3 = inlined_call_operand.hbm [shape: bf16[32,128], index: 3, kind: input, shape index: {}]   ;;  %s490_s4 = inlined_call_operand.vmem [shape: f32[1,128], index: 4, kind: input, shape index: {}]   ;;  %s491_s5 = inlined_call_operand.hbm [shape: f32[8,128], index: 5, kind: output, shape index: {}]  }
   0x1   :  { %11 = vsyncpa [#allocation6], 0 }
   0x2   :  { %12 = vsyncpa [#allocation4], 0  ;;  %s370_s18 = smov [#allocation2]   ;;  %s371_s20 = smov [#allocation5]  }
   0x3   :  { %s19_s19 = sshll.u32 %s370_s18, 4  ;;  %s32_s21 = sshll.u32 %s371_s20, 4  ;;  %s20_s19 = int_to_ptr.vmem [resolvable:$true] %s19_s19  ;;  %s413_s21 = int_to_ptr.vmem [resolvable:$true] %s32_s21 }
   0x4   :  { %s298_s24 = scalar_lea.hbm %s486_s0, 128 }
   0x5   :  { %p299_p0 = scmp.ne.s32.totalorder %s486_s0, %s298_s24  ;;  %p302_p1 = scmp.lt.u32.totalorder %s298_s24, %s486_s0 }
   0x7   :  { %p304_p2 = pnand %p302_p1, %p299_p0 }
   0x9   :  { %307 = shalt.err (!%p304_p2)
}
   0xa   :  { %s308_s29 = scalar_lea.vmem %s20_s19, 128  ;;  %p313_p4 = scmp.lt.s32.totalorder %s20_s19, %s20_s19 }
   0xb   :  { %p309_p3 = scmp.ne.s32.totalorder %s20_s19, %s308_s29  ;;  %p314_p5 = scmp.lt.s32.totalorder %s308_s29, %s308_s29 }
   0xd   :  { %p315_p6 = por %p314_p5, %p313_p4 }
   0xf   :  { %p316_p7 = pnand %p315_p6, %p309_p3 }
  0x11   :  { %319 = shalt.err (!%p316_p7)
}
  0x12   :  { %22 = dma.hbm_to_vmem [thread:$0]  %s486_s0, 128, %s20_s19, [#allocation3]  }
  0x13   :  { %s320_s9 = scalar_lea.hbm %s489_s3, 256 }
  0x14   :  { %p321_p8 = scmp.ne.s32.totalorder %s489_s3, %s320_s9  ;;  %p324_p9 = scmp.lt.u32.totalorder %s320_s9, %s489_s3 }
  0x16   :  { %p326_p10 = pnand %p324_p9, %p321_p8 }
  0x18   :  { %329 = shalt.err (!%p326_p10)
}
  0x19   :  { %s330_s14 = scalar_lea.vmem %s413_s21, 256  ;;  %p335_p12 = scmp.lt.s32.totalorder %s413_s21, %s413_s21 }
  0x1a   :  { %p331_p11 = scmp.ne.s32.totalorder %s413_s21, %s330_s14  ;;  %p336_p13 = scmp.lt.s32.totalorder %s330_s14, %s330_s14 }
  0x1c   :  { %p337_p0 = por %p336_p13, %p335_p12 }
  0x1e   :  { %p338_p1 = pnand %p337_p0, %p331_p11 }
  0x20   :  { %341 = shalt.err (!%p338_p1)
}
  0x21   :  { %s372_s0 = smov 64   ;;  %s373_s15 = smov 4  }
  0x22   :  { %38 = dma.hbm_to_vmem [thread:$0]  %s489_s3, 256, %s413_s21, [#allocation6], %s372_s0, %s372_s0, %s373_s15  }
  0x23   :  { %364 = dma.done.wait [#allocation3], 128  }
  0x24   :  { %365 = vsyncadd [#allocation3], 4294967168 }
  0x25   :  { %366 = dma.done.wait [#allocation6], 256  }
  0x26   :  { %367 = vsyncadd [#allocation6], 4294967040  ;;  %v374_v0 = vmov 0.0   ;;  %vm375_vm0 = vmmov 0   ;;  %v292_v1 = vld [vmem:[#allocation5] sm:$0xff]   ;;  %v293_v2 = vld [vmem:[#allocation5 + $0x8] sm:$0xff]  }
  0x27   :  { %267 = vmatprep.subr.bf16.mxu0 %v374_v0  ;;  %271 = vmatprep.mubr.msk.bf16.mxu0 %vm375_vm0, %v374_v0  ;;  %v48_v3 = vld [vmem:[#allocation2] sm:$0xff]  ;;  %v376_v19 = vmov 683565275   ;;  %v377_v21 = vmov 2475754826   ;;  %vm185_vm14 = vcmask 261120  }
  0x28   :  { %268 = vmatpush3.bf16.msra.mxu0 %v292_v1  ;;  %v254_v4 = vld [vmem:[%s487_s1] ss:$0 sm:$0xff]  ;;  %v378_v23 = vmov 2131351028   ;;  %v379_v25 = vmov 2102212464  }
  0x29   :  { %v255_v5 = vld [vmem:[%s488_s2] ss:$0 sm:$0xff]  ;;  %269 = vmatprep.subr.bf16.mxu0 %v374_v0  ;;  %v56_v6 = vmul.f32 %v254_v4, %v48_v3  ;;  %v380_v27 = vmov 920167782   ;;  %v381_v34 = vmov 1326507024  }
  0x2a   :  { %s382_s3 = smov [#allocation7]  }
  0x2b   :  { %v450_v7 = vadd.f32 %v255_v5, %v56_v6  ;;  %s244_s21 = sshll.u32 %s382_s3, 4  ;;  %s245_s21 = int_to_ptr.vmem [resolvable:$true] %s244_s21 }
  0x2c   :  { %270 = vmatpush3.bf16.msra.mxu0 %v293_v2  ;;  %s342_s23 = scalar_lea.vmem %s245_s21, 128  ;;  %p347_p3 = scmp.lt.s32.totalorder %s245_s21, %s245_s21 }
  0x2d   :  { %v68_v8 = vand.u32 2139095040, %v450_v7  ;;  %v65_v10 = vand.u32 2147483647, %v450_v7  ;;  %vm67_vm8 = vcmp.lt.s32.totalorder %v450_v7, 0  ;;  %vm157_vm13 = vweird.f32 %v450_v7  ;;  %p343_p2 = scmp.ne.s32.totalorder %s245_s21, %s342_s23  ;;  %p348_p4 = scmp.lt.s32.totalorder %s342_s23, %s342_s23 }
  0x2f   :  { %v69_v9 = vshrl.u32 %v68_v8, 23  ;;  %v72_v13 = vand.u32 8388607, %v65_v10  ;;  %vm66_vm9 = vcmp.le.f32.partialorder %v65_v10, 0.7853982  ;;  %p349_p5 = por %p348_p4, %p347_p3 }
  0x31   :  { %v256_v11 = vadd.s32 4294967169, %v69_v9  ;;  %v73_v16 = vor.u32 8388608, %v72_v13  ;;  %p350_p6 = pnand %p349_p5, %p343_p2 }
  0x33   :  { %v75_v12 = vadd.s32 1, %v256_v11  ;;  %v113_v36 = vshll.u32 %v73_v16, 8 }
  0x35   :  { %vm76_vm1 = vcmp.gt.s32.totalorder %v75_v12, 0 }
  0x36   :  { %v77_v14 = vsel %vm76_vm1, %v75_v12, 0 }
  0x37   :  { %v79_v15 = vand.u32 31, %v77_v14  ;;  %v78_v17 = vshrl.u32 %v77_v14, 5 }
  0x39   :  { %v80_v18 = vsub.s32 32, %v79_v15  ;;  %v82_v20 = vshll.u32 %v376_v19, %v79_v15  ;;  %v85_v22 = vshll.u32 %v377_v21, %v79_v15  ;;  %v88_v24 = vshll.u32 %v378_v23, %v79_v15 }
  0x3a   :  { %v91_v26 = vshll.u32 %v379_v25, %v79_v15  ;;  %v94_v28 = vshll.u32 %v380_v27, %v79_v15  ;;  %vm97_vm2 = vcmp.lt.s32.totalorder %v78_v17, 1  ;;  %vm100_vm3 = vcmp.lt.s32.totalorder %v78_v17, 4 }
  0x3b   :  { %v81_v29 = vshrl.u32 %v376_v19, %v80_v18  ;;  %v83_v30 = vshrl.u32 %v377_v21, %v80_v18  ;;  %v86_v31 = vshrl.u32 %v378_v23, %v80_v18  ;;  %v89_v32 = vshrl.u32 %v379_v25, %v80_v18 }
  0x3c   :  { %v92_v33 = vshrl.u32 %v380_v27, %v80_v18  ;;  %v95_v35 = vshrl.u32 %v381_v34, %v80_v18  ;;  %vm98_vm4 = vcmp.lt.s32.totalorder %v78_v17, 2  ;;  %vm99_vm5 = vcmp.lt.s32.totalorder %v78_v17, 3 }
  0x3d   :  { %v84_v37 = vor.u32 %v83_v30, %v82_v20  ;;  %v87_v38 = vor.u32 %v86_v31, %v85_v22  ;;  %v90_v39 = vor.u32 %v89_v32, %v88_v24 }
  0x3e   :  { %v93_v40 = vor.u32 %v92_v33, %v91_v26  ;;  %v96_v41 = vor.u32 %v95_v35, %v94_v28 }
  0x3f   :  { %v101_v42 = vsel %vm97_vm2, %v81_v29, %v84_v37  ;;  %v102_v43 = vsel %vm100_vm3, %v90_v39, 2102212464  ;;  %v105_v44 = vsel %vm97_vm2, %v84_v37, %v87_v38  ;;  %v109_v45 = vsel %vm97_vm2, %v87_v38, %v90_v39 }
  0x40   :  { %v103_v46 = vsel %vm99_vm5, %v87_v38, %v102_v43  ;;  %v106_v47 = vsel %vm100_vm3, %v93_v40, 920167782  ;;  %v110_v48 = vsel %vm100_vm3, %v96_v41, 1326507024 }
  0x41   :  { %v107_v49 = vsel %vm99_vm5, %v90_v39, %v106_v47  ;;  %v111_v50 = vsel %vm99_vm5, %v93_v40, %v110_v48  ;;  %v104_v51 = vsel %vm98_vm4, %v101_v42, %v103_v46 }
  0x42   :  { %v108_v52 = vsel %vm98_vm4, %v105_v44, %v107_v49  ;;  %v112_v53 = vsel %vm98_vm4, %v109_v45, %v111_v50  ;;  %v120_v58 = vmul.u32 %v113_v36, %v104_v51 }
  0x43   :  { %v456_v54 = vmul.u32.u64.low %v113_v36, %v112_v53  ;;  %v457_v55 = vmul.u32.u64.high %v113_v36, %v112_v53, %v456_v54  ;;  %v459_v56 = vmul.u32.u64.low %v113_v36, %v108_v52  ;;  %v460_v57 = vmul.u32.u64.high %v113_v36, %v108_v52, %v459_v56  ;;  %v263_v36 = vld [vmem:[%s490_s4] ss:$0 sm:$0xff] }
  0x45   :  { %vm122_vm6 = vc.u32 %v457_v55, %v459_v56  ;;  %v123_v59 = vadd.s32 1, %v460_v57  ;;  %v121_v6 = vadd.s32 %v459_v56, %v457_v55 }
  0x47   :  { %v124_v60 = vsel %vm122_vm6, %v123_v59, %v460_v57 }
  0x48   :  { %v125_v61 = vadd.s32 %v124_v60, %v120_v58 }
  0x4a   :  { %v126_v62 = vadd.s32 536870912, %v125_v61 }
  0x4c   :  { %v127_v63 = vshrl.u32 %v126_v62, 30 }
  0x4e   :  { %v128_v0 = vshll.u32 %v127_v63, 30  ;;  %v151_v22 = vsub.s32 4, %v127_v63 }
  0x50   :  { %v129_v1 = vsub.s32 %v125_v61, %v128_v0  ;;  %v152_v25 = vsel %vm67_vm8, %v151_v22, %v127_v63 }
  0x51   :  { %v154_v26 = vsel %vm66_vm9, 0, %v152_v25 }
  0x52   :  { %v131_v2 = vsub.s32 0, %v129_v1  ;;  %v158_v27 = vand.u32 3, %v154_v26 }
  0x54   :  { %v257_v3 = vmin.u32 %v131_v2, %v129_v1  ;;  %vm163_vm10 = vcmp.eq.s32.totalorder %v158_v27, 2  ;;  %vm160_vm11 = vcmp.eq.s32.totalorder %v158_v27, 0  ;;  %vm159_vm12 = vcmp.lt.s32.totalorder %v158_v27, 2 }
  0x56   :  { %v133_v4 = vclz %v257_v3 }
  0x58   :  { %v258_v5 = vadd.s32 4294967294, %v133_v4 }
  0x5a   :  { %vm259_vm7 = vcmp.lt.s32.totalorder %v258_v5, 0 }
  0x5b   :  { %v136_v8 = vsel %vm259_vm7, 0, %v258_v5 }
  0x5c   :  { %v137_v9 = vsub.s32 32, %v136_v8  ;;  %v138_v11 = vshll.u32 %v129_v1, %v136_v8  ;;  %v141_v12 = vsub.s32 4294967266, %v136_v8 }
  0x5e   :  { %v139_v13 = vshrl.u32 %v121_v6, %v137_v9  ;;  %v142_v14 = vadd.s32 127, %v141_v12 }
  0x60   :  { %v140_v15 = vor.u32 %v139_v13, %v138_v11  ;;  %v143_v16 = vshll.u32 %v142_v14, 23 }
  0x62   :  { %v144_v17 = vor.u32 4788187, %v143_v16  ;;  %v147_v18 = vcvt.s32.f32 %v140_v15 }
  0x64   :  { %v145_v19 = vand.u32 2147483647, %v144_v17 }
  0x66   :  { %v148_v20 = vmul.f32 %v147_v18, %v145_v19 }
  0x68   :  { %v149_v21 = vxor.u32 2147483648, %v148_v20 }
  0x6a   :  { %v150_v23 = vsel %vm67_vm8, %v149_v21, %v148_v20 }
  0x6b   :  { %v153_v24 = vsel %vm66_vm9, %v450_v7, %v150_v23 }
  0x6c   :  { %294 = vcosq.f32 %v153_v24 }
  0x6d   :  { %296 = vsinq.f32 %v153_v24 }
  0x76   :  { %v295_v28 = vpop.eup %294 }
  0x77   :  { %v297_v29 = vpop.eup %296  ;;  %v164_v30 = vxor.u32 2147483648, %v295_v28 }
  0x78   :  { %v161_v31 = vxor.u32 2147483648, %v297_v29 }
  0x79   :  { %v165_v10 = vsel %vm163_vm10, %v164_v30, %v297_v29 }
  0x7a   :  { %v162_v32 = vsel %vm160_vm11, %v295_v28, %v161_v31 }
  0x7b   :  { %v166_v33 = vsel %vm159_vm12, %v162_v32, %v165_v10 }
  0x7c   :  { %v167_v34 = vsel %vm157_vm13, nan, %v166_v33 }
  0x7d   :  { %v168_v35 = vpack.c.bf16 %v167_v34, %v167_v34 }
  0x7f   :  { %272 = vmatmul.mubr.msk.bf16.vlgmr.msra.gmra.mrb[0].mxu0 %vm185_vm14, %v168_v35 }
 0x152   :  { %v223_v37 = vpop.f32.mrb[0].mxu0 }
 0x153   :  { %v236_v38 = vmul.f32 %v263_v36, %v223_v37  ;;  %v273_v39 = vpop.f32.mrb[1].mxu0 }
 0x154   :  { %v226_v40 = vpop.f32.mrb[2].mxu0 }
 0x155   :  { %237 = vst [vmem:[#allocation7] sm:$0xff] %v236_v38  ;;  %v274_v7 = vpop.f32.mrb[3].mxu0 }
 0x156   :  { %353 = shalt.err (!%p350_p6)
}
 0x157   :  { %s354_s4 = scalar_lea.hbm %s491_s5, 128 }
 0x158   :  { %p355_p7 = scmp.ne.s32.totalorder %s491_s5, %s354_s4  ;;  %p358_p8 = scmp.lt.u32.totalorder %s354_s4, %s491_s5 }
 0x15a   :  { %p360_p9 = pnand %p358_p8, %p355_p7 }
 0x15c   :  { %363 = shalt.err (!%p360_p9)
}
 0x15d   :  { %247 = dma.vmem_to_hbm [thread:$0]  %s245_s21, 128, %s491_s5, [#allocation4]  }
 0x15e   :  { %368 = dma.done.wait [#allocation4], 128  }
 0x15f   :  { %369 = vsyncadd [#allocation4], 4294967168 }
 0x160   :  { %251 = vsyncpa [#allocation3], 1 }
 0x161   :  { %252 = vsyncpa [#allocation6], 1 }
 0x162   :  { %253 = vsyncpa [#allocation4], 1 }

</bundles_post_ra>
